<compile_context>
chip_gen: v7x
topology: tpu7x:2x2x1
jax: 0.10.0
libtpu: 0.0.40
codegen_flags: <defaults>
</compile_context>

<pallas_src>
import functools

import jax
import jax.numpy as jnp
from jax.experimental import pallas as pl
from jax.experimental.pallas import tpu as pltpu

_LANES = 128
_DEFAULT_BLOCK_BYTES = 2 * 1024 * 1024  # ~2 MiB per pipeline buffer


def _identity_kernel(x_ref, o_ref):
    # Hot path: straight VMEM copy of the current tile.
    o_ref[...] = x_ref[...]


def _pick_layout(n, itemsize, target_block_bytes):
    """Choose (rows, width, block_rows) for a lane-dense 2D slab of n elems.

    Returns None if n is not a multiple of 128 (caller uses padded fallback).
    """
    width = None
    for mult in (8, 4, 2, 1):          # prefer the widest lane-dense slab
        w = _LANES * mult
        if n % w == 0:
            width = w
            break
    if width is None:
        return None
    rows = n // width
    # Sub-32-bit dtypes pack along sublanes: 8 rows (32-bit), 16 (16-bit),
    # 32 (8-bit).  Keep block *bytes* (not elements) near the target.
    sublane = 8 * max(1, 4 // itemsize)
    block_rows = (target_block_bytes // (width * itemsize)) // sublane * sublane
    block_rows = max(block_rows, sublane)
    if block_rows >= rows:
        block_rows = rows              # single full-extent block (always legal)
    return rows, width, block_rows


def _copy_2d(x2d, *, block_rows, alias_input):
    rows, width = x2d.shape
    n_bytes = x2d.size * jnp.dtype(x2d.dtype).itemsize
    grid = (pl.cdiv(rows, block_rows),)
    return pl.pallas_call(
        _identity_kernel,
        out_shape=jax.ShapeDtypeStruct((rows, width), x2d.dtype),
        grid_spec=pltpu.PrefetchScalarGridSpec(
            num_scalar_prefetch=0,
            grid=grid,
            in_specs=[pl.BlockSpec((block_rows, width), lambda i: (i, 0))],
            out_specs=pl.BlockSpec((block_rows, width), lambda i: (i, 0)),
        ),
        compiler_params=pltpu.CompilerParams(
            dimension_semantics=("parallel",),
        ),
        cost_estimate=pl.CostEstimate(
            flops=0, transcendentals=0, bytes_accessed=2 * n_bytes),
        input_output_aliases=({0: 0} if alias_input else {}),
    )(x2d)


def _identity_padded(x, n, block_bytes, alias_input):
    # Rare fallback: flat size is not a multiple of 128 lanes, so a free
    # lane-dense reshape is impossible.  Pad the tail (one extra XLA pass)
    # and slice it back off afterwards.
    itemsize = jnp.dtype(x.dtype).itemsize
    pad = (-n) % _LANES
    flat = jnp.concatenate([jnp.ravel(x), jnp.zeros((pad,), dtype=x.dtype)])
    rows, width, block_rows = _pick_layout(n + pad, itemsize, block_bytes)
    out2d = _copy_2d(flat.reshape(rows, width),
                     block_rows=block_rows, alias_input=alias_input)
    return out2d.reshape(-1)[:n].reshape(x.shape)


@functools.partial(jax.jit, static_argnames=("block_bytes", "alias_input"))
def _identity_jit(x, block_bytes, alias_input):
    n = x.size
    if n == 0:
        return x                        # nothing to copy
    itemsize = jnp.dtype(x.dtype).itemsize
    layout = _pick_layout(n, itemsize, block_bytes)
    if layout is None:
        return _identity_padded(x, n, block_bytes, alias_input)
    rows, width, block_rows = layout
    x2d = x.reshape(rows, width)        # free (bitcast) reshape under jit
    out2d = _copy_2d(x2d, block_rows=block_rows, alias_input=alias_input)
    return out2d.reshape(x.shape)


def identity(x: jax.Array, *,
             block_bytes: int = _DEFAULT_BLOCK_BYTES,
             alias_input: bool = False) -> jax.Array:
    """Identity forward pass: returns a tensor equal to `x` (shape/dtype kept).

    Set alias_input=True (and donate `x` at the enclosing jit boundary) to let
    XLA reuse the input HBM buffer for the output.
    """
    return _identity_jit(x, block_bytes=block_bytes, alias_input=alias_input)


if __name__ == "__main__":
    key = jax.random.PRNGKey(0)
    k0, k1, k2 = jax.random.split(key, 3)

    # Primary check: NCHW f32, matching the PyTorch module's typical input.
    x = jax.random.normal(k0, (2, 4, 16, 16), dtype=jnp.float32)
    y = identity(x)
    jax.block_until_ready(y)
    assert y.shape == x.shape, (y.shape, x.shape)
    assert y.dtype == x.dtype, (y.dtype, x.dtype)
    assert bool(jnp.all(y == x)), "Identity kernel output mismatch (f32)"

    # bf16 path: exercises dtype-aware sublane tiling + input/output aliasing.
    xb = jax.random.normal(k1, (4, 8, 128), dtype=jnp.bfloat16)
    yb = identity(xb, alias_input=True)
    jax.block_until_ready(yb)
    assert yb.shape == xb.shape and yb.dtype == xb.dtype
    assert bool(jnp.all(yb == xb)), "Identity kernel output mismatch (bf16)"

    # Ragged size (not a multiple of 128 elements) exercises the padded path.
    xr = jax.random.normal(k2, (3, 5, 7), dtype=jnp.float32)
    yr = identity(xr)
    jax.block_until_ready(yr)
    assert yr.shape == xr.shape
    assert bool(jnp.all(yr == xr)), "Identity kernel output mismatch (ragged)"

    print("KERNEL_OK")
</pallas_src>

<mosaic_0001>
module attributes {stable_mosaic.version = 11 : i64} {
  func.func @_identity_kernel(%arg0: i32, %arg1: memref<2x1024xf32, #tpu.memory_space<vmem>>, %arg2: memref<2x1024xf32, #tpu.memory_space<vmem>>) attributes {dimension_semantics = [#tpu.dimension_semantics<parallel>], iteration_bounds = array<i64: 1>, scalar_prefetch = 0 : i64, scratch_operands = 0 : i64, tpu.core_type = #tpu.core_type<tc>, window_params = [{transform_indices = @transform_0, window_bounds = array<i64: 2, 1024>}, {transform_indices = @transform_1, window_bounds = array<i64: 2, 1024>}]} {
    %c0 = arith.constant 0 : index
    %c0_0 = arith.constant 0 : index
    %0 = vector.load %arg1[%c0, %c0_0] : memref<2x1024xf32, #tpu.memory_space<vmem>>, vector<2x1024xf32>
    %c0_1 = arith.constant 0 : index
    %c0_2 = arith.constant 0 : index
    %1 = vector.load %arg2[%c0_1, %c0_2] : memref<2x1024xf32, #tpu.memory_space<vmem>>, vector<2x1024xf32>
    tpu.vector_store %arg2[%c0_1, %c0_2], %0 {strides = array<i32>} : memref<2x1024xf32, #tpu.memory_space<vmem>>, vector<2x1024xf32>,
    return
  }
  func.func @transform_0(%arg0: i32) -> (i32, i32) {
    %c0_i32 = arith.constant 0 : i32
    %c0_i32_0 = arith.constant 0 : i32
    return %arg0, %c0_i32 : i32, i32
  }
  func.func @transform_1(%arg0: i32) -> (i32, i32) {
    %c0_i32 = arith.constant 0 : i32
    %c0_i32_0 = arith.constant 0 : i32
    return %arg0, %c0_i32 : i32, i32
  }
}

</mosaic_0001>

<bundles_post_ra>
// kernel: _identity_jit.1
= control target key start
LH: loop header
LB: loop body
LE: loop exit
PB: predicated region body
PF: predicated region fallthrough
CT: control target
= control target key end

     0   :  { %s38_s0 = inlined_call_operand.vmem [shape: f32[2,1024], index: 0, kind: input, shape index: {}]   ;;  %s39_s1 = inlined_call_operand.vmem [shape: f32[2,1024], index: 1, kind: output, shape index: {}]  }
   0x1   :  { %v8_v0 = vld [vmem:[%s38_s0] sm:$0xff]  ;;  %v9_v1 = vld [vmem:[%s38_s0 + $0x8] sm:$0xff] }
   0x2   :  { %10 = vst [vmem:[%s39_s1] sm:$0xff] %v8_v0  ;;  %11 = vst [vmem:[%s39_s1 + $0x8] sm:$0xff] %v9_v1 }

</bundles_post_ra>
